<compile_context>
chip_gen: v6e
topology: v6e:2x2x1
jax: 0.10.0
libtpu: 0.0.40
codegen_flags: <defaults>
</compile_context>

<pallas_src>
import jax
import jax.numpy as jnp
from jax.experimental import pallas as pl
from jax.experimental.pallas import tpu as pltpu

LANES = 128
TARGET_BLOCK_BYTES = 2 * 1024 * 1024  # ~2 MiB per block -> ~85% of HBM roofline


def _scale_kernel(scale_ref, x_ref, o_ref):
    # scale_ref : SMEM (1,) float32 scalar parameter
    # x_ref/o_ref : VMEM tile (block_rows, 128)
    o_ref[...] = (x_ref[...] * scale_ref[0]).astype(o_ref.dtype)


def _scale_slab(slab: jax.Array, scale_arr: jax.Array) -> jax.Array:
    """Run the elementwise scale kernel over a lane-dense (rows, 128) slab."""
    rows, lanes = slab.shape
    assert lanes == LANES

    itemsize = slab.dtype.itemsize
    # Keep the second-minor block dim a clean multiple of the sublane packing
    # (8 rows f32, 16 rows bf16, 32 rows int8) so vregs are fully packed.
    row_align = 8 * max(1, 4 // itemsize)
    target_rows = max(
        row_align,
        (TARGET_BLOCK_BYTES // (LANES * itemsize)) // row_align * row_align,
    )

    if rows <= target_rows:
        block_rows = rows          # single block == full dim (always legal)
    else:
        block_rows = target_rows   # multiple of (8 * packing), (8,128)-legal

    # Ragged last block is handled by Pallas (OOB reads ignored, OOB writes
    # dropped), so no tile shrinking / whole-array padding is needed.
    grid = (pl.cdiv(rows, block_rows),)

    return pl.pallas_call(
        _scale_kernel,
        out_shape=jax.ShapeDtypeStruct((rows, LANES), slab.dtype),
        grid_spec=pltpu.PrefetchScalarGridSpec(
            num_scalar_prefetch=0,
            grid=grid,
            in_specs=[
                pl.BlockSpec(memory_space=pltpu.MemorySpace.SMEM),    # scale
                pl.BlockSpec((block_rows, LANES), lambda i: (i, 0)),  # x tile
            ],
            out_specs=pl.BlockSpec((block_rows, LANES), lambda i: (i, 0)),
        ),
        compiler_params=pltpu.CompilerParams(
            # "parallel" lets v7x shard independent grid steps across its 2 TCs.
            dimension_semantics=("parallel",),
        ),
    )(scale_arr, slab)


def scale_forward(x: jax.Array, scale: jax.Array) -> jax.Array:
    """Pallas TPU equivalent of `Scale.forward`: x * scale (scalar param)."""
    orig_shape = x.shape
    orig_dtype = x.dtype

    # nn.Parameter(torch.tensor(scale, dtype=torch.float)) -> float32 scalar.
    scale_arr = jnp.asarray(scale, dtype=jnp.float32).reshape(1)

    flat = x.reshape(-1)
    total = flat.shape[0]

    if total % LANES == 0 and total > 0:
        # Common / fast path: zero-copy reshape to a lane-dense slab, no padding.
        slab = flat.reshape(total // LANES, LANES)
        out_flat = _scale_slab(slab, scale_arr).reshape(-1)
    else:
        # Ragged tail (< 128 elements): run the kernel on the lane-aligned bulk
        # and scale the tiny remainder in plain JAX, instead of padding/slicing
        # the whole array (which would roughly triple HBM traffic).
        bulk = (total // LANES) * LANES
        tail = (flat[bulk:].astype(jnp.float32) * scale_arr[0]).astype(orig_dtype)
        if bulk > 0:
            slab = flat[:bulk].reshape(bulk // LANES, LANES)
            bulk_out = _scale_slab(slab, scale_arr).reshape(-1)
            out_flat = jnp.concatenate([bulk_out, tail])
        else:
            out_flat = tail

    return out_flat.reshape(orig_shape).astype(orig_dtype)


if __name__ == "__main__":
    key = jax.random.PRNGKey(0)
    # NCHW input, small shape.
    x = jax.random.normal(key, (2, 4, 16, 16), dtype=jnp.float32)

    # Default parameter value (scale=1.0), then a non-trivial one.
    scale_param = jnp.float32(1.0)
    y = scale_forward(x, scale_param)
    jax.block_until_ready(y)
    assert y.shape == x.shape and y.dtype == x.dtype
    assert jnp.allclose(y, x * scale_param, atol=1e-6, rtol=1e-6)

    y2 = scale_forward(x, jnp.float32(2.5))
    jax.block_until_ready(y2)
    assert jnp.allclose(y2, x * 2.5, atol=1e-6, rtol=1e-6)

    # bf16 input exercises the explicit output-dtype cast in the kernel.
    xb = x.astype(jnp.bfloat16)
    yb = scale_forward(xb, jnp.float32(2.5))
    jax.block_until_ready(yb)
    assert yb.dtype == jnp.bfloat16
    assert jnp.allclose(
        yb.astype(jnp.float32), xb.astype(jnp.float32) * 2.5, atol=2e-2, rtol=2e-2
    )

    # Non-multiple-of-128 element count exercises the ragged-tail path.
    x3 = jax.random.normal(jax.random.PRNGKey(1), (5, 31), dtype=jnp.float32)
    y3 = scale_forward(x3, jnp.float32(-0.5))
    jax.block_until_ready(y3)
    assert jnp.allclose(y3, x3 * -0.5, atol=1e-6, rtol=1e-6)

    print("KERNEL_OK")
</pallas_src>

<mosaic_0001>
module attributes {stable_mosaic.version = 11 : i64} {
  func.func @_scale_kernel(%arg0: i32, %arg1: memref<1xf32, #tpu.memory_space<smem>>, %arg2: memref<16x128xf32, #tpu.memory_space<vmem>>, %arg3: memref<16x128xf32, #tpu.memory_space<vmem>>) attributes {dimension_semantics = [#tpu.dimension_semantics<parallel>], iteration_bounds = array<i64: 1>, scalar_prefetch = 0 : i64, scratch_operands = 0 : i64, tpu.core_type = #tpu.core_type<tc>, window_params = [{transform_indices = @transform_0, window_bounds = array<i64: 1>}, {transform_indices = @transform_1, window_bounds = array<i64: 16, 128>}, {transform_indices = @transform_2, window_bounds = array<i64: 16, 128>}]} {
    %c0 = arith.constant 0 : index
    %c0_0 = arith.constant 0 : index
    %0 = vector.load %arg2[%c0, %c0_0] : memref<16x128xf32, #tpu.memory_space<vmem>>, vector<16x128xf32>
    %c0_1 = arith.constant 0 : index
    %1 = memref.load %arg1[%c0_1] : memref<1xf32, #tpu.memory_space<smem>>
    %2 = vector.broadcast %1 : f32 to vector<16x128xf32>
    %3 = arith.mulf %0, %2 : vector<16x128xf32>
    %c0_2 = arith.constant 0 : index
    %c0_3 = arith.constant 0 : index
    %4 = vector.load %arg3[%c0_2, %c0_3] : memref<16x128xf32, #tpu.memory_space<vmem>>, vector<16x128xf32>
    tpu.vector_store %arg3[%c0_2, %c0_3], %3 {strides = array<i32>} : memref<16x128xf32, #tpu.memory_space<vmem>>, vector<16x128xf32>,
    return
  }
  func.func @transform_0(%arg0: i32) -> i32 {
    %c0_i32 = arith.constant 0 : i32
    %c0_i32_0 = arith.constant 0 : i32
    return %c0_i32 : i32
  }
  func.func @transform_1(%arg0: i32) -> (i32, i32) {
    %c0_i32 = arith.constant 0 : i32
    %c0_i32_0 = arith.constant 0 : i32
    return %arg0, %c0_i32 : i32, i32
  }
  func.func @transform_2(%arg0: i32) -> (i32, i32) {
    %c0_i32 = arith.constant 0 : i32
    %c0_i32_0 = arith.constant 0 : i32
    return %arg0, %c0_i32 : i32, i32
  }
}

</mosaic_0001>

<bundles_post_ra>
// kernel: tpu_custom_call.1
= control target key start
LH: loop header
LB: loop body
LE: loop exit
PB: predicated region body
PF: predicated region fallthrough
CT: control target
= control target key end

     0   :  { %8 = vsyncpa [#allocation4], 0  ;;  %s128_s0 = inlined_call_operand.<no memory space> [shape: f32[1], index: 0, kind: input, shape index: {}]   ;;  %s129_s1 = inlined_call_operand.hbm [shape: f32[16,128], index: 1, kind: input, shape index: {}]   ;;  %s130_s2 = inlined_call_operand.hbm [shape: f32[16,128], index: 2, kind: output, shape index: {}]  }
   0x1   :  { %9 = vsyncpa [#allocation5], 0  ;;  %s100_s9 = smov [#allocation3]  }
   0x2   :  { %s17_s10 = sshll.u32 %s100_s9, 4  ;;  %s18_s10 = int_to_ptr.vmem [resolvable:$true] %s17_s10 }
   0x3   :  { %s64_s11 = scalar_lea.vmem %s18_s10, 256  ;;  %p69_p1 = scmp.lt.s32.totalorder %s18_s10, %s18_s10 }
   0x4   :  { %p65_p0 = scmp.ne.s32.totalorder %s18_s10, %s64_s11  ;;  %p70_p2 = scmp.lt.s32.totalorder %s64_s11, %s64_s11 }
   0x6   :  { %p71_p3 = por %p70_p2, %p69_p1 }
   0x8   :  { %p72_p4 = pnand %p71_p3, %p65_p0 }
   0xa   :  { %75 = shalt.err (!%p72_p4)
}
   0xb   :  { %s101_s12 = smov 128   ;;  %s102_s13 = smov 8  }
   0xc   :  { %23 = dma.hbm_to_vmem [thread:$0]  %s129_s1, 256, %s18_s10, [#allocation4], %s101_s12, %s101_s12, %s102_s13  }
   0xd   :  { %96 = dma.done.wait [#allocation4], 256  }
   0xe   :  { %97 = vsyncadd [#allocation4], 4294967040  ;;  %v30_v0 = vstv %s128_s0  ;;  %s103_s18 = smov [#allocation6]   ;;  %v27_v1 = vld [vmem:[#allocation3] sm:$0xff]  ;;  %v28_v2 = vld [vmem:[#allocation3 + $0x8] sm:$0xff] }
   0xf   :  { %s40_s19 = sshll.u32 %s103_s18, 4  ;;  %v31_v3 = vmul.f32 %v30_v0, %v27_v1  ;;  %v32_v4 = vmul.f32 %v30_v0, %v28_v2  ;;  %s41_s19 = int_to_ptr.vmem [resolvable:$true] %s40_s19 }
  0x10   :  { %s76_s20 = scalar_lea.vmem %s41_s19, 256  ;;  %p81_p6 = scmp.lt.s32.totalorder %s41_s19, %s41_s19 }
  0x11   :  { %33 = vst [vmem:[#allocation6] sm:$0xff] %v31_v3  ;;  %34 = vst [vmem:[#allocation6 + $0x8] sm:$0xff] %v32_v4  ;;  %p77_p5 = scmp.ne.s32.totalorder %s41_s19, %s76_s20  ;;  %p82_p7 = scmp.lt.s32.totalorder %s76_s20, %s76_s20 }
  0x13   :  { %p83_p8 = por %p82_p7, %p81_p6 }
  0x15   :  { %p84_p9 = pnand %p83_p8, %p77_p5 }
  0x17   :  { %87 = shalt.err (!%p84_p9)
}
  0x18   :  { %46 = dma.vmem_to_hbm [thread:$0]  %s41_s19, 256, %s130_s2, [#allocation5], %s101_s12, %s101_s12, %s102_s13  }
  0x19   :  { %98 = dma.done.wait [#allocation5], 256  }
  0x1a   :  { %99 = vsyncadd [#allocation5], 4294967040 }
  0x1b   :  { %50 = vsyncpa [#allocation4], 1 }
  0x1c   :  { %51 = vsyncpa [#allocation5], 1 }

</bundles_post_ra>
